<compile_context>
chip_gen: v7x
topology: tpu7x:2x2x1
jax: 0.10.0
libtpu: 0.0.40
codegen_flags: <defaults>
</compile_context>

<pallas_src>
import jax
import jax.numpy as jnp
import numpy as np
from jax.experimental import pallas as pl
from jax.experimental.pallas import tpu as pltpu

DROPOUT_RATE = 0.3  # module __init__ arg (deterministic, in-script)

# keep element  <=>  uniform u32 bits < round(rate * 2**32)   (P = DROPOUT_RATE)
_KEEP_THRESHOLD_U32 = np.uint32(round(DROPOUT_RATE * float(1 << 32)))

_LANES = 128        # vreg lane width
_TILE_ROWS = 1024   # rows per grid step when gridded (6 bufs x 512 KiB x 2 << 32 MiB)


def _latent_kernel(zm_ref, zl_ref, z_ref, bits_ref, kl_ref, z_out_ref):
    zm = zm_ref[...]
    zl = zl_ref[...]

    # inner = 1 + logvar - mean^2 - exp(logvar)   (exp goes to the EUP slot)
    inner = 1.0 + zl - zm * zm - jnp.exp(zl)
    kl_ref[...] = -0.5 * inner

    # dropout mask: single integer compare + select (keeps where bits < threshold)
    keep = bits_ref[...] < _KEEP_THRESHOLD_U32
    z_out_ref[...] = jnp.where(keep, z_ref[...], 0.0).astype(z_out_ref.dtype)


def latent_forward(data, key):
    """data: dict with 'z_mean', 'z_logvar', 'z' of shape [B, D] (float32)."""
    z_mean = data["z_mean"]
    z_logvar = data["z_logvar"]
    z = data["z"]
    B, D = z_mean.shape
    n = B * D

    # ---- lane-dense layout: flatten to (rows, 128), pad flat length if needed ----
    rows = pl.cdiv(n, _LANES)
    if rows > _TILE_ROWS:
        tile_rows = _TILE_ROWS
        rows_pad = ((rows + tile_rows - 1) // tile_rows) * tile_rows
    else:
        tile_rows = max(rows, 1)          # single full-array block (no (8,128) issue)
        rows_pad = tile_rows
    n_pad = rows_pad * _LANES
    grid = (rows_pad // tile_rows,)

    def to_lane_dense(x):
        flat = x.reshape(-1).astype(jnp.float32)
        if n_pad != n:
            flat = jnp.pad(flat, (0, n_pad - n))   # zeros -> kl contribution is 0
        return flat.reshape(rows_pad, _LANES)

    zm2 = to_lane_dense(z_mean)
    zl2 = to_lane_dense(z_logvar)
    z2 = to_lane_dense(z)
    bits = jax.random.bits(key, (rows_pad, _LANES), dtype=jnp.uint32)

    spec = pl.BlockSpec((tile_rows, _LANES), lambda i: (i, 0))

    kl2, z_out2 = pl.pallas_call(
        _latent_kernel,
        out_shape=(
            jax.ShapeDtypeStruct((rows_pad, _LANES), jnp.float32),   # kl (lane-dense)
            jax.ShapeDtypeStruct((rows_pad, _LANES), jnp.float32),   # masked z
        ),
        grid=grid,
        in_specs=[spec, spec, spec, spec],
        out_specs=(spec, spec),
        compiler_params=pltpu.CompilerParams(
            dimension_semantics=("parallel",),   # megacore-shardable on v7x
        ),
    )(zm2, zl2, z2, bits)

    kl = kl2.reshape(-1)[:n].reshape(B, D)
    z_out = z_out2.reshape(-1)[:n].reshape(B, D).astype(z.dtype)

    # kl_loss = mean_b(sum_d(kl)) = sum(kl) / B   (layout-agnostic, done by XLA)
    kl_loss = jnp.sum(kl) / B

    out = dict(data)
    out["kl"] = kl
    out["kl_loss"] = kl_loss
    out["z"] = z_out
    return out


if __name__ == "__main__":
    key = jax.random.PRNGKey(0)
    k1, k2, k3, k_drop = jax.random.split(key, 4)
    B, D = 8, 32
    data = {
        "z_mean": jax.random.normal(k1, (B, D), dtype=jnp.float32),
        "z_logvar": jax.random.normal(k2, (B, D), dtype=jnp.float32) * 0.1,
        "z": jax.random.normal(k3, (B, D), dtype=jnp.float32),
    }

    out = latent_forward(data, key=k_drop)
    jax.block_until_ready(out["kl"])
    jax.block_until_ready(out["kl_loss"])
    jax.block_until_ready(out["z"])

    # reference check for the deterministic parts (kl, kl_loss)
    zm, zl = data["z_mean"], data["z_logvar"]
    inner_ref = 1.0 + zl - zm ** 2 - jnp.exp(zl)
    kl_ref = -0.5 * inner_ref
    kl_loss_ref = jnp.mean(-0.5 * jnp.sum(inner_ref, axis=1))

    assert out["kl"].shape == (B, D)
    assert out["z"].shape == (B, D)
    assert jnp.allclose(out["kl"], kl_ref, atol=1e-5, rtol=1e-5)
    assert jnp.allclose(out["kl_loss"], kl_loss_ref, atol=1e-5, rtol=1e-5)
    # masked z must be either 0 or equal to the original value
    zero_or_same = jnp.logical_or(out["z"] == 0.0, out["z"] == data["z"])
    assert bool(jnp.all(zero_or_same))

    print("KERNEL_OK")
</pallas_src>

<mosaic_0001>
module attributes {stable_mosaic.version = 11 : i64} {
  func.func @_latent_kernel(%arg0: i32, %arg1: memref<2x128xf32, #tpu.memory_space<vmem>>, %arg2: memref<2x128xf32, #tpu.memory_space<vmem>>, %arg3: memref<2x128xf32, #tpu.memory_space<vmem>>, %arg4: memref<2x128xi32, #tpu.memory_space<vmem>>, %arg5: memref<2x128xf32, #tpu.memory_space<vmem>>, %arg6: memref<2x128xf32, #tpu.memory_space<vmem>>) attributes {dimension_semantics = [#tpu.dimension_semantics<parallel>], iteration_bounds = array<i64: 1>, scalar_prefetch = 0 : i64, scratch_operands = 0 : i64, tpu.core_type = #tpu.core_type<tc>, window_params = [{transform_indices = @transform_0, window_bounds = array<i64: 2, 128>}, {transform_indices = @transform_1, window_bounds = array<i64: 2, 128>}, {transform_indices = @transform_2, window_bounds = array<i64: 2, 128>}, {transform_indices = @transform_3, window_bounds = array<i64: 2, 128>}, {transform_indices = @transform_4, window_bounds = array<i64: 2, 128>}, {transform_indices = @transform_5, window_bounds = array<i64: 2, 128>}]} {
    %c0 = arith.constant 0 : index
    %c0_0 = arith.constant 0 : index
    %0 = vector.load %arg1[%c0, %c0_0] : memref<2x128xf32, #tpu.memory_space<vmem>>, vector<2x128xf32>
    %c0_1 = arith.constant 0 : index
    %c0_2 = arith.constant 0 : index
    %1 = vector.load %arg2[%c0_1, %c0_2] : memref<2x128xf32, #tpu.memory_space<vmem>>, vector<2x128xf32>
    %cst = arith.constant 1.000000e+00 : f32
    %2 = vector.broadcast %cst : f32 to vector<2x128xf32>
    %3 = arith.addf %2, %1 : vector<2x128xf32>
    %4 = arith.mulf %0, %0 : vector<2x128xf32>
    %5 = arith.subf %3, %4 : vector<2x128xf32>
    %6 = math.exp %1 : vector<2x128xf32>
    %7 = arith.subf %5, %6 : vector<2x128xf32>
    %cst_3 = arith.constant -5.000000e-01 : f32
    %8 = vector.broadcast %cst_3 : f32 to vector<2x128xf32>
    %9 = arith.mulf %8, %7 : vector<2x128xf32>
    %c0_4 = arith.constant 0 : index
    %c0_5 = arith.constant 0 : index
    %10 = vector.load %arg5[%c0_4, %c0_5] : memref<2x128xf32, #tpu.memory_space<vmem>>, vector<2x128xf32>
    tpu.vector_store %arg5[%c0_4, %c0_5], %9 {strides = array<i32>} : memref<2x128xf32, #tpu.memory_space<vmem>>, vector<2x128xf32>,
    %c0_6 = arith.constant 0 : index
    %c0_7 = arith.constant 0 : index
    %11 = vector.load %arg4[%c0_6, %c0_7] : memref<2x128xi32, #tpu.memory_space<vmem>>, vector<2x128xi32>
    %c1288490189_i32 = arith.constant 1288490189 : i32
    %12 = vector.broadcast %c1288490189_i32 : i32 to vector<2x128xi32>
    %13 = arith.cmpi ult, %11, %12 : vector<2x128xi32>
    %c0_8 = arith.constant 0 : index
    %c0_9 = arith.constant 0 : index
    %14 = vector.load %arg3[%c0_8, %c0_9] : memref<2x128xf32, #tpu.memory_space<vmem>>, vector<2x128xf32>
    %cst_10 = arith.constant 0.000000e+00 : f32
    %15 = vector.broadcast %cst_10 : f32 to vector<2x128xf32>
    %16 = arith.select %13, %14, %15 : vector<2x128xi1>, vector<2x128xf32>
    %c0_11 = arith.constant 0 : index
    %c0_12 = arith.constant 0 : index
    %17 = vector.load %arg6[%c0_11, %c0_12] : memref<2x128xf32, #tpu.memory_space<vmem>>, vector<2x128xf32>
    tpu.vector_store %arg6[%c0_11, %c0_12], %16 {strides = array<i32>} : memref<2x128xf32, #tpu.memory_space<vmem>>, vector<2x128xf32>,
    return
  }
  func.func @transform_0(%arg0: i32) -> (i32, i32) {
    %c0_i32 = arith.constant 0 : i32
    %c0_i32_0 = arith.constant 0 : i32
    return %arg0, %c0_i32 : i32, i32
  }
  func.func @transform_1(%arg0: i32) -> (i32, i32) {
    %c0_i32 = arith.constant 0 : i32
    %c0_i32_0 = arith.constant 0 : i32
    return %arg0, %c0_i32 : i32, i32
  }
  func.func @transform_2(%arg0: i32) -> (i32, i32) {
    %c0_i32 = arith.constant 0 : i32
    %c0_i32_0 = arith.constant 0 : i32
    return %arg0, %c0_i32 : i32, i32
  }
  func.func @transform_3(%arg0: i32) -> (i32, i32) {
    %c0_i32 = arith.constant 0 : i32
    %c0_i32_0 = arith.constant 0 : i32
    return %arg0, %c0_i32 : i32, i32
  }
  func.func @transform_4(%arg0: i32) -> (i32, i32) {
    %c0_i32 = arith.constant 0 : i32
    %c0_i32_0 = arith.constant 0 : i32
    return %arg0, %c0_i32 : i32, i32
  }
  func.func @transform_5(%arg0: i32) -> (i32, i32) {
    %c0_i32 = arith.constant 0 : i32
    %c0_i32_0 = arith.constant 0 : i32
    return %arg0, %c0_i32 : i32, i32
  }
}

</mosaic_0001>

<bundles_post_ra>
// kernel: tpu_custom_call.1
= control target key start
LH: loop header
LB: loop body
LE: loop exit
PB: predicated region body
PF: predicated region fallthrough
CT: control target
= control target key end

     0   :  { %11 = vsyncpa [#allocation3], 0  ;;  %s232_s0 = inlined_call_operand.hbm [shape: f32[2,128], index: 0, kind: input, shape index: {}]   ;;  %s233_s1 = inlined_call_operand.vmem [shape: f32[2,128], index: 1, kind: input, shape index: {}]   ;;  %s234_s2 = inlined_call_operand.vmem [shape: f32[2,128], index: 2, kind: input, shape index: {}]   ;;  %s235_s3 = inlined_call_operand.vmem [shape: u32[2,128], index: 3, kind: input, shape index: {}]   ;;  %s236_s4 = inlined_call_operand.hbm [shape: f32[2,128], index: 4, kind: output, shape index: {0}]   ;;  %s237_s5 = inlined_call_operand.hbm [shape: f32[2,128], index: 5, kind: output, shape index: {1}]  }
   0x1   :  { %12 = vsyncpa [#allocation4], 0 }
   0x2   :  { %13 = vsyncpa [#allocation7], 0  ;;  %s154_s18 = smov [#allocation2]   ;;  %s82_s22 = scalar_lea.hbm %s232_s0, 32 }
   0x3   :  { %s20_s19 = sshll.u32 %s154_s18, 4  ;;  %p83_p0 = scmp.ne.s32.totalorder %s232_s0, %s82_s22  ;;  %s21_s19 = int_to_ptr.vmem [resolvable:$true] %s20_s19 }
   0x4   :  { %p86_p1 = scmp.lt.u32.totalorder %s82_s22, %s232_s0 }
   0x6   :  { %p88_p2 = pnand %p86_p1, %p83_p0 }
   0x8   :  { %91 = shalt.err (!%p88_p2)
}
   0x9   :  { %s92_s27 = scalar_lea.vmem %s21_s19, 32  ;;  %p97_p4 = scmp.lt.s32.totalorder %s21_s19, %s21_s19 }
   0xa   :  { %p93_p3 = scmp.ne.s32.totalorder %s21_s19, %s92_s27  ;;  %p98_p5 = scmp.lt.s32.totalorder %s92_s27, %s92_s27 }
   0xc   :  { %p99_p6 = por %p98_p5, %p97_p4 }
   0xe   :  { %p100_p7 = pnand %p99_p6, %p93_p3 }
  0x10   :  { %103 = shalt.err (!%p100_p7)
}
  0x11   :  { %23 = dma.hbm_to_vmem [thread:$0]  %s232_s0, 32, %s21_s19, [#allocation3]  }
  0x12   :  { %148 = dma.done.wait [#allocation3], 32  }
  0x13   :  { %149 = vsyncadd [#allocation3], 4294967264  ;;  %s155_s30 = smov [#allocation6]   ;;  %v34_v0 = vld [vmem:[%s233_s1] sm:$0x3] }
  0x14   :  { %s64_s6 = sshll.u32 %s155_s30, 4  ;;  %v43_v1 = vld [vmem:[%s235_s3] sm:$0x3]  ;;  %v38_v2 = vmul.f32 1.442695, %v34_v0  ;;  %s65_s6 = int_to_ptr.vmem [resolvable:$true] %s64_s6 }
  0x15   :  { %vm44_vm0 = vcmp.lt.u32.totalorder %v43_v1, 1288490189  ;;  %v45_v3 = vld [vmem:[%s234_s2] sm:$0x3]  ;;  %s104_s0 = scalar_lea.vmem %s65_s6, 32  ;;  %p109_p9 = scmp.lt.s32.totalorder %s65_s6, %s65_s6 }
  0x16   :  { %v33_v4 = vld [vmem:[#allocation2] sm:$0x3]  ;;  %80 = vpow2.f32 %v38_v2  ;;  %v46_v5 = vsel %vm44_vm0, %v45_v3, 0.0  ;;  %p105_p8 = scmp.ne.s32.totalorder %s65_s6, %s104_s0  ;;  %p110_p10 = scmp.lt.s32.totalorder %s104_s0, %s104_s0 }
  0x17   :  { %47 = vst [vmem:[#allocation6] sm:$0x3] %v46_v5 }
  0x18   :  { %p111_p11 = por %p110_p10, %p109_p9 }
  0x1a   :  { %p112_p12 = pnand %p111_p11, %p105_p8 }
  0x1c   :  { %115 = shalt.err (!%p112_p12)
}
  0x1d   :  { %s116_s13 = scalar_lea.hbm %s237_s5, 32 }
  0x1e   :  { %p117_p13 = scmp.ne.s32.totalorder %s237_s5, %s116_s13  ;;  %p120_p0 = scmp.lt.u32.totalorder %s116_s13, %s237_s5 }
  0x20   :  { %p122_p1 = pnand %p120_p0, %p117_p13 }
  0x22   :  { %125 = shalt.err (!%p122_p1)
}
  0x23   :  { %67 = dma.vmem_to_hbm [thread:$0]  %s65_s6, 32, %s237_s5, [#allocation7]   ;;  %v35_v6 = vadd.f32 1.0, %v34_v0  ;;  %v36_v7 = vmul.f32 %v33_v4, %v33_v4  ;;  %v81_v9 = vpop.eup %80 }
  0x24   :  { %s156_s19 = smov [#allocation5]  }
  0x25   :  { %v37_v8 = vsub.f32 %v35_v6, %v36_v7  ;;  %s54_s20 = sshll.u32 %s156_s19, 4  ;;  %s55_s20 = int_to_ptr.vmem [resolvable:$true] %s54_s20 }
  0x26   :  { %s126_s21 = scalar_lea.vmem %s55_s20, 32  ;;  %p131_p3 = scmp.lt.s32.totalorder %s55_s20, %s55_s20 }
  0x27   :  { %v40_v10 = vsub.f32 %v37_v8, %v81_v9  ;;  %p127_p2 = scmp.ne.s32.totalorder %s55_s20, %s126_s21  ;;  %p132_p4 = scmp.lt.s32.totalorder %s126_s21, %s126_s21 }
  0x29   :  { %v41_v11 = vmul.f32 -0.5, %v40_v10  ;;  %p133_p5 = por %p132_p4, %p131_p3 }
  0x2b   :  { %42 = vst [vmem:[#allocation5] sm:$0x3] %v41_v11  ;;  %p134_p6 = pnand %p133_p5, %p127_p2 }
  0x2d   :  { %137 = shalt.err (!%p134_p6)
}
  0x2e   :  { %s138_s5 = scalar_lea.hbm %s236_s4, 32 }
  0x2f   :  { %p139_p7 = scmp.ne.s32.totalorder %s236_s4, %s138_s5  ;;  %p142_p8 = scmp.lt.u32.totalorder %s138_s5, %s236_s4 }
  0x31   :  { %p144_p9 = pnand %p142_p8, %p139_p7 }
  0x33   :  { %147 = shalt.err (!%p144_p9)
}
  0x34   :  { %57 = dma.vmem_to_hbm [thread:$0]  %s55_s20, 32, %s236_s4, [#allocation4]  }
  0x35   :  { %150 = dma.done.wait [#allocation4], 32  }
  0x36   :  { %151 = vsyncadd [#allocation4], 4294967264 }
  0x37   :  { %152 = dma.done.wait [#allocation7], 32  }
  0x38   :  { %153 = vsyncadd [#allocation7], 4294967264 }
  0x39   :  { %74 = vsyncpa [#allocation3], 1 }
  0x3a   :  { %75 = vsyncpa [#allocation4], 1 }
  0x3b   :  { %76 = vsyncpa [#allocation7], 1 }

</bundles_post_ra>
